<compile_context>
chip_gen: v5e
topology: v5e:2x2
jax: 0.10.0
libtpu: 0.0.40
codegen_flags: <defaults>
</compile_context>

<pallas_src>
import numpy as np
import jax
import jax.numpy as jnp
from jax.experimental import pallas as pl
from jax.experimental.pallas import tpu as pltpu

# ----------------------- static configuration (small demo shapes) -----------------------
B = 2
C_IN = 3
H_IN = W_IN = 16
PATCH = 7
STRIDE = 4
PAD = PATCH // 2                                    # 3
EMBED = 128                                         # lane-dense embedding width
H_OUT = (H_IN + 2 * PAD - PATCH) // STRIDE + 1      # 4
W_OUT = (W_IN + 2 * PAD - PATCH) // STRIDE + 1      # 4
N = H_OUT * W_OUT                                   # 16 tokens per image
K = C_IN * PATCH * PATCH                            # 147 im2col reduction dim
BN = B * N                                          # 32 GEMM rows (batch folded into M)
EPS = 1e-5                                          # nn.LayerNorm default

TM = min(BN, 128)                                   # M tile (rows per grid step)
assert BN % TM == 0


# ----------------------- Pallas kernel -----------------------
def patch_embed_kernel(p_ref, w_ref, s_ref, o_ref):
    # One MXU GEMM per M tile: (TM, K) bf16 @ (K, EMBED) bf16 -> f32 accumulation.
    y = jnp.dot(p_ref[...], w_ref[...], preferred_element_type=jnp.float32)
    s = s_ref[...]                                   # (8, EMBED) f32 slab: rows 0/1/2 = bias/gamma/beta
    y = y + s[0:1, :]                                # conv bias (f32)
    # LayerNorm over the embedding dim, f32 statistics, rsqrt on the EUP.
    mu = jnp.mean(y, axis=-1, keepdims=True)
    var = jnp.mean((y - mu) ** 2, axis=-1, keepdims=True)
    o_ref[...] = (y - mu) * jax.lax.rsqrt(var + EPS) * s[1:2, :] + s[2:3, :]


# ----------------------- parameter preprocessing (hoisted, run once) -----------------------
def prepare_params(w_conv, b_conv, gamma, beta):
    """One-time layout prep; NOT part of the per-call path."""
    # (EMBED, C, KH, KW) -> (K, EMBED); row order (c, kh, kw) matches OIHW flattening. bf16 for the MXU.
    w_km = jnp.transpose(w_conv.reshape(EMBED, K)).astype(jnp.bfloat16)
    slab = jnp.zeros((8, EMBED), jnp.float32)
    slab = slab.at[0].set(b_conv).at[1].set(gamma).at[2].set(beta)
    return w_km, slab


# ----------------------- forward -----------------------
@jax.jit
def _forward(x_nchw, w_km, param_slab):
    # im2col as a single fusable op: (B, K, Ho, Wo) with feature order (c, kh, kw),
    # exactly matching the flattened PyTorch OIHW conv weight.
    pat = jax.lax.conv_general_dilated_patches(
        x_nchw, filter_shape=(PATCH, PATCH),
        window_strides=(STRIDE, STRIDE), padding=((PAD, PAD), (PAD, PAD)))
    patches = pat.transpose(0, 2, 3, 1).reshape(BN, K).astype(jnp.bfloat16)   # rows (b, ho, wo)

    out = pl.pallas_call(
        patch_embed_kernel,
        out_shape=jax.ShapeDtypeStruct((BN, EMBED), jnp.float32),
        grid_spec=pltpu.PrefetchScalarGridSpec(
            num_scalar_prefetch=0,
            grid=(BN // TM,),                                     # 1 step at demo size
            in_specs=[
                pl.BlockSpec((TM, K), lambda i: (i, 0)),          # patches, M-tiled
                pl.BlockSpec((K, EMBED), lambda i: (0, 0)),       # bf16 weight, resident
                pl.BlockSpec((8, EMBED), lambda i: (0, 0)),       # bias/gamma/beta slab
            ],
            out_specs=pl.BlockSpec((TM, EMBED), lambda i: (i, 0)),
        ),
        compiler_params=pltpu.CompilerParams(
            dimension_semantics=("parallel",),                    # M tiles split across TCs when batched
            allow_input_fusion=[True, False, False],              # fuse im2col layout/cast into input 0
        ),
    )(patches, w_km, param_slab)

    return out.reshape(B, N, EMBED)


def overlap_patch_embed(x_nchw, w_km, param_slab):
    """Same contract as the module: (tokens (B, N, EMBED), H, W)."""
    return _forward(x_nchw, w_km, param_slab), H_OUT, W_OUT


# ----------------------- pure-JAX reference (mirrors the PyTorch module) -----------------------
def reference(x_nchw, w_conv, b_conv, gamma, beta, conv_dtype=jnp.float32):
    y = jax.lax.conv_general_dilated(
        x_nchw.astype(conv_dtype), w_conv.astype(conv_dtype),
        window_strides=(STRIDE, STRIDE), padding=((PAD, PAD), (PAD, PAD)),
        dimension_numbers=("NCHW", "OIHW", "NCHW"),
        preferred_element_type=jnp.float32,
        precision=jax.lax.Precision.HIGHEST)
    y = y + b_conv.reshape(1, EMBED, 1, 1)
    y = y.reshape(B, EMBED, N).transpose(0, 2, 1)                 # flatten(2).transpose(1, 2)
    mu = jnp.mean(y, axis=-1, keepdims=True)
    var = jnp.mean((y - mu) ** 2, axis=-1, keepdims=True)
    return (y - mu) * jax.lax.rsqrt(var + EPS) * gamma.reshape(1, 1, EMBED) + beta.reshape(1, 1, EMBED)


# ----------------------- main -----------------------
if __name__ == "__main__":
    key = jax.random.PRNGKey(0)
    k1, k2, k3, k4, k5 = jax.random.split(key, 5)

    x = jax.random.normal(k1, (B, C_IN, H_IN, W_IN), dtype=jnp.float32)
    w_conv = (0.05 * jax.random.normal(k2, (EMBED, C_IN, PATCH, PATCH))).astype(jnp.float32)
    b_conv = (0.05 * jax.random.normal(k3, (EMBED,))).astype(jnp.float32)
    gamma = (1.0 + 0.05 * jax.random.normal(k4, (EMBED,))).astype(jnp.float32)
    beta = (0.05 * jax.random.normal(k5, (EMBED,))).astype(jnp.float32)

    # Hoisted, one-time parameter preprocessing.
    w_km, slab = prepare_params(w_conv, b_conv, gamma, beta)

    y, Ho, Wo = overlap_patch_embed(x, w_km, slab)
    y = jax.block_until_ready(y)
    assert (Ho, Wo) == (H_OUT, W_OUT)

    # Tight layout/indexing check: reference with the same bf16-rounded GEMM inputs
    # (only f32 summation-order differences remain).
    y_ref_bf16 = jax.block_until_ready(reference(x, w_conv, b_conv, gamma, beta, jnp.bfloat16))
    np.testing.assert_allclose(np.asarray(y), np.asarray(y_ref_bf16), rtol=1e-3, atol=1e-3)

    # End-to-end check against the full-f32 module semantics (loosened only because the
    # kernel feeds bf16 to the MXU).
    y_ref = jax.block_until_ready(reference(x, w_conv, b_conv, gamma, beta, jnp.float32))
    np.testing.assert_allclose(np.asarray(y), np.asarray(y_ref), rtol=2e-2, atol=2e-2)

    print("KERNEL_OK")
</pallas_src>

<mosaic_0001>
module attributes {stable_mosaic.version = 11 : i64} {
  func.func @patch_embed_kernel(%arg0: i32, %arg1: memref<32x147xbf16, #tpu.memory_space<vmem>>, %arg2: memref<147x128xbf16, #tpu.memory_space<vmem>>, %arg3: memref<8x128xf32, #tpu.memory_space<vmem>>, %arg4: memref<32x128xf32, #tpu.memory_space<vmem>>) attributes {dimension_semantics = [#tpu.dimension_semantics<parallel>], iteration_bounds = array<i64: 1>, scalar_prefetch = 0 : i64, scratch_operands = 0 : i64, tpu.core_type = #tpu.core_type<tc>, window_params = [{transform_indices = @transform_0, window_bounds = array<i64: 32, 147>}, {pipeline_mode = #tpu.pipeline_mode<synchronous>, transform_indices = @transform_1, window_bounds = array<i64: 147, 128>}, {pipeline_mode = #tpu.pipeline_mode<synchronous>, transform_indices = @transform_2, window_bounds = array<i64: 8, 128>}, {transform_indices = @transform_3, window_bounds = array<i64: 32, 128>}]} {
    %c0 = arith.constant 0 : index
    %c0_0 = arith.constant 0 : index
    %0 = vector.load %arg1[%c0, %c0_0] : memref<32x147xbf16, #tpu.memory_space<vmem>>, vector<32x147xbf16>
    %c0_1 = arith.constant 0 : index
    %c0_2 = arith.constant 0 : index
    %1 = vector.load %arg2[%c0_1, %c0_2] : memref<147x128xbf16, #tpu.memory_space<vmem>>, vector<147x128xbf16>
    %cst = arith.constant dense<0.000000e+00> : vector<32x128xf32>
    %2 = tpu.matmul %0, %1, %cst {dimension_numbers = #tpu.dot_dimension_numbers<[1], [0], [0], [1], [0, 0, 1, 1], [], []>} : vector<32x147xbf16>, vector<147x128xbf16>, vector<32x128xf32> -> vector<32x128xf32>
    %c0_3 = arith.constant 0 : index
    %c0_4 = arith.constant 0 : index
    %3 = vector.load %arg3[%c0_3, %c0_4] : memref<8x128xf32, #tpu.memory_space<vmem>>, vector<8x128xf32>
    %4 = vector.extract_strided_slice %3 {offsets = [0, 0], sizes = [1, 128], strides = [1, 1]} : vector<8x128xf32> to vector<1x128xf32>
    %5 = vector.broadcast %4 : vector<1x128xf32> to vector<32x128xf32>
    %6 = arith.addf %2, %5 : vector<32x128xf32>
    %cst_5 = arith.constant dense<0.000000e+00> : vector<32xf32>
    %7 = vector.multi_reduction <add>, %6, %cst_5 [1] : vector<32x128xf32> to vector<32xf32>
    %8 = vector.shape_cast %7 : vector<32xf32> to vector<32x1xf32>
    %cst_6 = arith.constant 1.280000e+02 : f32
    %9 = vector.broadcast %cst_6 : f32 to vector<32x1xf32>
    %10 = arith.divf %8, %9 : vector<32x1xf32>
    %11 = vector.broadcast %10 : vector<32x1xf32> to vector<32x128xf32>
    %12 = arith.subf %6, %11 : vector<32x128xf32>
    %13 = arith.mulf %12, %12 : vector<32x128xf32>
    %cst_7 = arith.constant dense<0.000000e+00> : vector<32xf32>
    %14 = vector.multi_reduction <add>, %13, %cst_7 [1] : vector<32x128xf32> to vector<32xf32>
    %15 = vector.shape_cast %14 : vector<32xf32> to vector<32x1xf32>
    %cst_8 = arith.constant 1.280000e+02 : f32
    %16 = vector.broadcast %cst_8 : f32 to vector<32x1xf32>
    %17 = arith.divf %15, %16 : vector<32x1xf32>
    %18 = vector.broadcast %10 : vector<32x1xf32> to vector<32x128xf32>
    %19 = arith.subf %6, %18 : vector<32x128xf32>
    %cst_9 = arith.constant 9.99999974E-6 : f32
    %20 = vector.broadcast %cst_9 : f32 to vector<32x1xf32>
    %21 = arith.addf %17, %20 : vector<32x1xf32>
    %22 = math.rsqrt %21 : vector<32x1xf32>
    %23 = vector.broadcast %22 : vector<32x1xf32> to vector<32x128xf32>
    %24 = arith.mulf %19, %23 : vector<32x128xf32>
    %25 = vector.extract_strided_slice %3 {offsets = [1, 0], sizes = [1, 128], strides = [1, 1]} : vector<8x128xf32> to vector<1x128xf32>
    %26 = vector.broadcast %25 : vector<1x128xf32> to vector<32x128xf32>
    %27 = arith.mulf %24, %26 : vector<32x128xf32>
    %28 = vector.extract_strided_slice %3 {offsets = [2, 0], sizes = [1, 128], strides = [1, 1]} : vector<8x128xf32> to vector<1x128xf32>
    %29 = vector.broadcast %28 : vector<1x128xf32> to vector<32x128xf32>
    %30 = arith.addf %27, %29 : vector<32x128xf32>
    %c0_10 = arith.constant 0 : index
    %c0_11 = arith.constant 0 : index
    %31 = vector.load %arg4[%c0_10, %c0_11] : memref<32x128xf32, #tpu.memory_space<vmem>>, vector<32x128xf32>
    tpu.vector_store %arg4[%c0_10, %c0_11], %30 {strides = array<i32>} : memref<32x128xf32, #tpu.memory_space<vmem>>, vector<32x128xf32>,
    return
  }
  func.func @transform_0(%arg0: i32) -> (i32, i32) {
    %c0_i32 = arith.constant 0 : i32
    %c0_i32_0 = arith.constant 0 : i32
    return %arg0, %c0_i32 : i32, i32
  }
  func.func @transform_1(%arg0: i32) -> (i32, i32) {
    %c0_i32 = arith.constant 0 : i32
    %c0_i32_0 = arith.constant 0 : i32
    %c0_i32_1 = arith.constant 0 : i32
    return %c0_i32, %c0_i32_0 : i32, i32
  }
  func.func @transform_2(%arg0: i32) -> (i32, i32) {
    %c0_i32 = arith.constant 0 : i32
    %c0_i32_0 = arith.constant 0 : i32
    %c0_i32_1 = arith.constant 0 : i32
    return %c0_i32, %c0_i32_0 : i32, i32
  }
  func.func @transform_3(%arg0: i32) -> (i32, i32) {
    %c0_i32 = arith.constant 0 : i32
    %c0_i32_0 = arith.constant 0 : i32
    return %arg0, %c0_i32 : i32, i32
  }
}

</mosaic_0001>

<bundles_post_ra>
// kernel: _forward.1
= control target key start
LH: loop header
LB: loop body
LE: loop exit
PB: predicated region body
PF: predicated region fallthrough
CT: control target
= control target key end

     0   :  { %vm123_vm0 = vcmask 1040384   ;;  %vm124_vm1 = vcmask 1041408   ;;  %v403_v2 = vmov 65535   ;;  %s510_s0 = inlined_call_operand.vmem [shape: bf16[32,147], index: 0, kind: input, shape index: {}]   ;;  %s511_s1 = inlined_call_operand.vmem [shape: bf16[147,128], index: 1, kind: input, shape index: {}]   ;;  %s512_s2 = inlined_call_operand.vmem [shape: f32[8,128], index: 2, kind: input, shape index: {}]   ;;  %s513_s3 = inlined_call_operand.hbm [shape: f32[32,128], index: 3, kind: output, shape index: {}]  }
   0x1   :  { %v352_v0 = vld [vmem:[%s511_s1 + $0x38] sm:$0xff]  ;;  %v38_v1 = vld [vmem:[%s511_s1 + $0x48] sm:$0x3]  ;;  %v125_v3 = vsel %vm123_vm0, 4294967295, %v403_v2  ;;  %v351_v4 = vld [vmem:[%s511_s1 + $0x30] sm:$0xff] }
   0x2   :  { %130 = vmatpush.bf16.msra.mxu0 %v352_v0  ;;  %354 = vmatpush.bf16.msra.mxu2 %v352_v0  ;;  %v96_v5 = vunpack.c.l.b16 %v38_v1  ;;  %v126_v6 = vsel %vm124_vm1, %v125_v3, 0  ;;  %v350_v8 = vld [vmem:[%s511_s1 + $0x28] sm:$0xff] }
   0x4   :  { %v106_v7 = vpack.c.b16 %v96_v5, %v96_v5 }
   0x6   :  { %131 = vmatpush.bf16.msra.mxu0 %v351_v4  ;;  %355 = vmatpush.bf16.msra.mxu2 %v351_v4  ;;  %v128_v9 = vand.u32 %v126_v6, %v106_v7 }
   0x7   :  { %8 = vsyncpa [#allocation3], 0  ;;  %v353_v10 = vld [vmem:[%s511_s1 + $0x40] sm:$0xff]  ;;  %v291_v12 = vld [vmem:[%s510_s0 + $0x8] sm:$0xf0]  ;;  %vm116_vm2 = vcmask 154624  }
   0x8   :  { %155 = vmatpush.bf16.msra.mxu1 %v128_v9  ;;  %v341_v11 = vld [vmem:[%s510_s0 + $0x4] sm:$0xf]  ;;  %v348_v15 = vld [vmem:[%s511_s1 + $0x18] sm:$0xff]  ;;  %v347_v16 = vld [vmem:[%s511_s1 + $0x10] sm:$0xff]  ;;  %v404_v46 = vmov 128.0   ;;  %s275_s24 = sshll.u32 %s513_s3, 4  ;;  %s276_s24 = int_to_ptr.hbm [resolvable:$true] %s275_s24 }
   0x9   :  { %v349_v13 = vld [vmem:[%s511_s1 + $0x20] sm:$0xff]  ;;  %v294_v14 = vor.u32 %v341_v11, %v291_v12  ;;  %v346_v17 = vld [vmem:[%s511_s1 + $0x8] sm:$0xff]  ;;  %v343_v18 = vld [vmem:[%s510_s0 + $0x14] sm:$0xf]  ;;  %367 = vrcp.f32 %v404_v46  ;;  %s406_s25 = smov 128   ;;  %s407_s26 = smov 8  }
   0xa   :  { %132 = vmatpush.bf16.msra.mxu0 %v350_v8  ;;  %356 = vmatpush.bf16.msra.mxu2 %v350_v8  ;;  %v299_v19 = vld [vmem:[%s510_s0 + $0x18] sm:$0xf0]  ;;  %v345_v20 = vld [vmem:[%s511_s1] sm:$0xff]  ;;  %v342_v22 = vld [vmem:[%s510_s0 + $0x4] sm:$0xf0] }
   0xb   :  { %v289_v21 = vld [vmem:[%s510_s0] sm:$0xf]  ;;  %v297_v23 = vld [vmem:[%s510_s0 + $0x10] sm:$0xf]  ;;  %v344_v24 = vld [vmem:[%s510_s0 + $0x14] sm:$0xf0]  ;;  %v302_v25 = vor.u32 %v343_v18, %v299_v19 }
   0xc   :  { %156 = vmatpush.bf16.msra.mxu1 %v353_v10  ;;  %v290_v26 = vor.u32 %v342_v22, %v289_v21  ;;  %v298_v27 = vor.u32 %v344_v24, %v297_v23  ;;  %v487_v29 = vld [vmem:[%s512_s2] sm:$0xff]  ;;  %s405_s0 = smov [#allocation2]  }
   0xd   :  { %v40_v31 = vperm.slane %v487_v29, 0  ;;  %s273_s2 = sshll.u32 %s405_s0, 4  ;;  %s274_s2 = int_to_ptr.vmem [resolvable:$true] %s273_s2 }
   0xe   :  { %133 = vmatpush.bf16.msra.mxu0 %v349_v13  ;;  %357 = vmatpush.bf16.msra.mxu2 %v349_v13 }
   0xf   :  { %339 = vmatmul.msk.bf16.vlgmr.msra.gmra.mxu1 %vm116_vm2, %v294_v14  ;;  %v368_v47 = vpop.eup %367 }
  0x10   :  { %v177_v48 = vmul.f32 128.0, %v368_v47  ;;  %vm181_vm3 = vweird.f32 %v368_v47 }
  0x12   :  { %134 = vmatpush.bf16.msra.mxu0 %v348_v15  ;;  %358 = vmatpush.bf16.msra.mxu2 %v348_v15  ;;  %v178_v49 = vsub.f32 1.0, %v177_v48 }
  0x14   :  { %v179_v50 = vmul.f32 %v368_v47, %v178_v49 }
  0x16   :  { %135 = vmatpush.bf16.msra.mxu0 %v347_v16  ;;  %359 = vmatpush.bf16.msra.mxu2 %v347_v16  ;;  %v180_v51 = vadd.f32 %v368_v47, %v179_v50 }
  0x18   :  { %v182_v52 = vsel %vm181_vm3, %v368_v47, %v180_v51 }
  0x1a   :  { %136 = vmatpush.bf16.msra.mxu0 %v346_v17  ;;  %360 = vmatpush.bf16.msra.mxu2 %v346_v17 }
  0x1e   :  { %137 = vmatpush.bf16.msra.mxu0 %v345_v20  ;;  %361 = vmatpush.bf16.msra.mxu2 %v345_v20 }
  0x1f   :  { %340 = vmatmul.msk.bf16.gmra.mxu1 %vm116_vm2, %v302_v25 }
  0x21   :  { %138 = vmatmul.bf16.vlgmr.msra.gmra.mxu0 %v290_v26  ;;  %143 = vmatmul.bf16.vlgmr.msra.gmra.mxu2 %v298_v27 }
  0x8c   :  { %v158_v28 = vpop.f32.mrf.mxu1 }
  0x94   :  { %v160_v30 = vpop.f32.mrf.mxu1 }
  0x9c   :  { %v163_v35 = vpop.f32.mrf.mxu1 }
  0x9e   :  { %v139_v32 = vpop.f32.mrf.mxu0 }
  0x9f   :  { %v140_v33 = vadd.f32 %v139_v32, %v40_v31 }
  0xa1   :  { %v159_v34 = vadd.f32 %v158_v28, %v140_v33  ;;  %v255_v28 = vperm.slane %v487_v29, 1  ;;  %v260_v33 = vperm.slane %v487_v29, 2 }
  0xa3   :  { %168 = vadd.xlane.f32.xlu0 %v159_v34 }
  0xa4   :  { %v144_v36 = vpop.f32.mrf.mxu2  ;;  %v165_v44 = vpop.f32.mrf.mxu1 }
  0xa5   :  { %v145_v37 = vadd.f32 %v144_v36, %v40_v31 }
  0xa6   :  { %v141_v38 = vpop.f32.mrf.mxu0 }
  0xa7   :  { %v142_v39 = vadd.f32 %v141_v38, %v40_v31  ;;  %v164_v40 = vadd.f32 %v163_v35, %v145_v37 }
  0xa9   :  { %172 = vadd.xlane.f32.xlu1 %v164_v40  ;;  %v161_v41 = vadd.f32 %v160_v30, %v142_v39 }
  0xab   :  { %170 = vadd.xlane.f32.xlu0 %v161_v41 }
  0xac   :  { %v146_v42 = vpop.f32.mrf.mxu2 }
  0xad   :  { %v147_v43 = vadd.f32 %v146_v42, %v40_v31 }
  0xaf   :  { %v166_v45 = vadd.f32 %v165_v44, %v147_v43 }
  0xb1   :  { %174 = vadd.xlane.f32.xlu1 %v166_v45 }
 0x116   :  { %v169_v53 = vpop.xlane.xlu0 %168 }
 0x117   :  { %v183_v54 = vmul.f32 %v182_v52, %v169_v53 }
 0x119   :  { %v187_v55 = vsub.f32 %v159_v34, %v183_v54 }
 0x11b   :  { %v191_v56 = vmul.f32 %v187_v55, %v187_v55 }
 0x11c   :  { %v173_v57 = vpop.xlane.xlu1 %172 }
 0x11d   :  { %v185_v58 = vmul.f32 %v182_v52, %v173_v57  ;;  %195 = vadd.xlane.f32.xlu2 %v191_v56 }
 0x11e   :  { %v171_v59 = vpop.xlane.xlu0 %170 }
 0x11f   :  { %v490_v60 = vsub.f32 %v164_v40, %v185_v58  ;;  %v184_v61 = vmul.f32 %v182_v52, %v171_v59 }
 0x121   :  { %v492_v62 = vsub.f32 %v161_v41, %v184_v61  ;;  %v193_v63 = vmul.f32 %v490_v60, %v490_v60 }
 0x123   :  { %199 = vadd.xlane.f32.xlu0 %v193_v63  ;;  %v192_v0 = vmul.f32 %v492_v62, %v492_v62 }
 0x124   :  { %v175_v1 = vpop.xlane.xlu1 %174 }
 0x125   :  { %v186_v2 = vmul.f32 %v182_v52, %v175_v1  ;;  %197 = vadd.xlane.f32.xlu2 %v192_v0 }
 0x127   :  { %v498_v3 = vsub.f32 %v166_v45, %v186_v2 }
 0x129   :  { %v194_v4 = vmul.f32 %v498_v3, %v498_v3 }
 0x12b   :  { %201 = vadd.xlane.f32.xlu1 %v194_v4 }
 0x190   :  { %v196_v5 = vpop.xlane.xlu2 %195 }
 0x191   :  { %v203_v6 = vmul.f32 %v196_v5, %v182_v52 }
 0x193   :  { %v207_v7 = vadd.f32 1e-05, %v203_v6 }
 0x195   :  { %369 = vrsqrt.f32 %v207_v7  ;;  %vm217_vm5 = vweird.f32 %v207_v7 }
 0x196   :  { %v200_v8 = vpop.xlane.xlu0 %199 }
 0x197   :  { %v205_v9 = vmul.f32 %v200_v8, %v182_v52 }
 0x198   :  { %v198_v10 = vpop.xlane.xlu2 %197 }
 0x199   :  { %v209_v11 = vadd.f32 1e-05, %v205_v9  ;;  %v204_v12 = vmul.f32 %v198_v10, %v182_v52 }
 0x19b   :  { %v370_v13 = vpop.eup %369  ;;  %371 = vrsqrt.f32 %v209_v11  ;;  %v208_v14 = vadd.f32 1e-05, %v204_v12  ;;  %vm237_vm8 = vweird.f32 %v209_v11 }
 0x19c   :  { %v212_v15 = vmul.f32 %v370_v13, %v207_v7  ;;  %vm218_vm4 = vweird.f32 %v370_v13 }
 0x19d   :  { %373 = vrsqrt.f32 %v208_v14  ;;  %vm219_vm6 = vmor %vm217_vm5, %vm218_vm4  ;;  %vm227_vm11 = vweird.f32 %v208_v14 }
 0x19e   :  { %v213_v16 = vmul.f32 %v370_v13, %v212_v15  ;;  %v202_v17 = vpop.xlane.xlu1 %201 }
 0x19f   :  { %v206_v18 = vmul.f32 %v202_v17, %v182_v52 }
 0x1a0   :  { %v214_v19 = vmul.f32 0.5, %v213_v16 }
 0x1a1   :  { %v372_v20 = vpop.eup %371  ;;  %v210_v21 = vadd.f32 1e-05, %v206_v18 }
 0x1a2   :  { %v215_v22 = vsub.f32 1.5, %v214_v19  ;;  %v232_v23 = vmul.f32 %v372_v20, %v209_v11  ;;  %vm238_vm7 = vweird.f32 %v372_v20 }
 0x1a3   :  { %v374_v24 = vpop.eup %373  ;;  %375 = vrsqrt.f32 %v210_v21  ;;  %vm239_vm10 = vmor %vm237_vm8, %vm238_vm7  ;;  %vm247_vm14 = vweird.f32 %v210_v21 }
 0x1a4   :  { %v216_v25 = vmul.f32 %v370_v13, %v215_v22  ;;  %v233_v26 = vmul.f32 %v372_v20, %v232_v23  ;;  %v222_v27 = vmul.f32 %v374_v24, %v208_v14  ;;  %vm228_vm9 = vweird.f32 %v374_v24 }
 0x1a5   :  { %vm229_vm12 = vmor %vm227_vm11, %vm228_vm9 }
 0x1a6   :  { %v220_v30 = vsel %vm219_vm6, %v370_v13, %v216_v25  ;;  %v234_v31 = vmul.f32 0.5, %v233_v26  ;;  %v223_v32 = vmul.f32 %v374_v24, %v222_v27 }
 0x1a7   :  { %v251_v34 = vmul.f32 %v220_v30, %v187_v55 }
 0x1a8   :  { %v235_v35 = vsub.f32 1.5, %v234_v31  ;;  %v224_v36 = vmul.f32 0.5, %v223_v32 }
 0x1a9   :  { %v376_v37 = vpop.eup %375  ;;  %v256_v38 = vmul.f32 %v255_v28, %v251_v34 }
 0x1aa   :  { %v236_v39 = vmul.f32 %v372_v20, %v235_v35  ;;  %v225_v40 = vsub.f32 1.5, %v224_v36  ;;  %v242_v41 = vmul.f32 %v376_v37, %v210_v21  ;;  %vm248_vm13 = vweird.f32 %v376_v37 }
 0x1ab   :  { %v261_v42 = vadd.f32 %v260_v33, %v256_v38  ;;  %vm249_vm15 = vmor %vm247_vm14, %vm248_vm13 }
 0x1ac   :  { %v240_v43 = vsel %vm239_vm10, %v372_v20, %v236_v39  ;;  %v226_v44 = vmul.f32 %v374_v24, %v225_v40  ;;  %v243_v45 = vmul.f32 %v376_v37, %v242_v41 }
 0x1ad   :  { %265 = vst [vmem:[#allocation2] sm:$0xff] %v261_v42  ;;  %v253_v29 = vmul.f32 %v240_v43, %v490_v60 }
 0x1ae   :  { %v230_v46 = vsel %vm229_vm12, %v374_v24, %v226_v44  ;;  %v244_v47 = vmul.f32 0.5, %v243_v45 }
 0x1af   :  { %v258_v48 = vmul.f32 %v255_v28, %v253_v29  ;;  %v252_v49 = vmul.f32 %v230_v46, %v492_v62 }
 0x1b0   :  { %v245_v50 = vsub.f32 1.5, %v244_v47 }
 0x1b1   :  { %v263_v51 = vadd.f32 %v260_v33, %v258_v48  ;;  %v257_v52 = vmul.f32 %v255_v28, %v252_v49 }
 0x1b2   :  { %v246_v53 = vmul.f32 %v376_v37, %v245_v50 }
 0x1b3   :  { %267 = vst [vmem:[#allocation2 + $0x10] sm:$0xff] %v263_v51  ;;  %v262_v54 = vadd.f32 %v260_v33, %v257_v52 }
 0x1b4   :  { %v250_v55 = vsel %vm249_vm15, %v376_v37, %v246_v53 }
 0x1b5   :  { %266 = vst [vmem:[#allocation2 + $0x8] sm:$0xff] %v262_v54  ;;  %v254_v56 = vmul.f32 %v250_v55, %v498_v3 }
 0x1b7   :  { %v259_v57 = vmul.f32 %v255_v28, %v254_v56 }
 0x1b9   :  { %v264_v58 = vadd.f32 %v260_v33, %v259_v57 }
 0x1bb   :  { %268 = vst [vmem:[#allocation2 + $0x18] sm:$0xff] %v264_v58 }
 0x1bc   :  { %281 = dma.vmem_to_hbm [thread:$0]  %s274_s2, 512, %s276_s24, [#allocation3], %s406_s25, %s406_s25, %s407_s26  }
 0x1bd   :  { %401 = dma.done.wait [#allocation3], 512  }
 0x1be   :  { %402 = vsyncadd [#allocation3], 4294966784 }
 0x1bf   :  { %286 = vsyncpa [#allocation3], 1 }

</bundles_post_ra>
